<compile_context>
chip_gen: v7x
topology: tpu7x:2x2x1
jax: 0.10.0
libtpu: 0.0.40
codegen_flags: <defaults>
</compile_context>

<pallas_src>
import jax
import jax.numpy as jnp
from jax import lax
from jax.experimental import pallas as pl
from jax.experimental.pallas import tpu as pltpu


def _rz_kernel(theta_ref, out_ref):
    # theta is a scalar in SMEM; everything else is generated on the VPU/EUP.
    half = theta_ref[0] * 0.5
    c = jnp.cos(half)
    s = jnp.sin(half)

    # Packed output layout (2, 4): columns [0,1] = real plane, [2,3] = imag.
    row = lax.broadcasted_iota(jnp.int32, (2, 4), 0)    # matrix row
    col4 = lax.broadcasted_iota(jnp.int32, (2, 4), 1)
    col = col4 & 1                                      # matrix col within plane
    plane = col4 >> 1                                   # 0 = re, 1 = im
    diag = row == col

    re_vals = jnp.full((2, 4), c, dtype=jnp.float32)    # cos on the diagonal
    im_vals = jnp.where(row == 0, -s, s)                # -sin / +sin on diagonal
    vals = jnp.where(plane == 0, re_vals, im_vals)
    out_ref[...] = jnp.where(diag, vals, jnp.float32(0.0))


def single_rz_forward(theta):
    """theta: shape (1,) float32. Returns complex64 tt-core of shape (1,2,2,1)."""
    packed = pl.pallas_call(
        _rz_kernel,
        out_shape=jax.ShapeDtypeStruct((2, 4), jnp.float32),
        in_specs=[pl.BlockSpec(memory_space=pltpu.MemorySpace.SMEM)],  # theta scalar
        out_specs=pl.BlockSpec((2, 4), lambda: (0, 0)),                # full-array block
    )(theta.astype(jnp.float32))

    re = packed[:, :2]
    im = packed[:, 2:]
    gate = (re + 1j * im).astype(jnp.complex64)
    return gate.reshape(1, 2, 2, 1)


if __name__ == "__main__":
    key = jax.random.PRNGKey(0)
    # theta = 2 * pi * rand(1), deterministic
    theta = 2.0 * jnp.pi * jax.random.uniform(key, (1,), dtype=jnp.float32)

    gate = single_rz_forward(theta)
    gate = jax.block_until_ready(gate)

    # Reference check (plain JAX) for the forward semantics.
    half = theta[0] * 0.5
    ref = (jnp.array([[1, 0], [0, 1]], dtype=jnp.complex64) * jnp.cos(half)
           + jnp.array([[-1j, 0], [0, 1j]], dtype=jnp.complex64) * jnp.sin(half)
           ).reshape(1, 2, 2, 1)
    assert gate.shape == (1, 2, 2, 1)
    assert gate.dtype == jnp.complex64
    assert jnp.allclose(gate, ref, atol=1e-6)

    print("KERNEL_OK")
</pallas_src>

<mosaic_0001>
module attributes {stable_mosaic.version = 11 : i64} {
  func.func @_rz_kernel(%arg0: memref<1xf32, #tpu.memory_space<smem>>, %arg1: memref<2x4xf32, #tpu.memory_space<vmem>>) attributes {dimension_semantics = [], scalar_prefetch = 0 : i64, scratch_operands = 0 : i64, tpu.core_type = #tpu.core_type<tc>} {
    %c0 = arith.constant 0 : index
    %0 = memref.load %arg0[%c0] : memref<1xf32, #tpu.memory_space<smem>>
    %cst = arith.constant 5.000000e-01 : f32
    %1 = arith.mulf %0, %cst : f32
    %2 = math.cos %1 : f32
    %3 = math.sin %1 : f32
    %4 = tpu.iota {dimensions = array<i32: 0>} : vector<2x4xi32>
    %5 = tpu.iota {dimensions = array<i32: 1>} : vector<2x4xi32>
    %c1_i32 = arith.constant 1 : i32
    %6 = vector.broadcast %c1_i32 : i32 to vector<2x4xi32>
    %7 = arith.andi %5, %6 : vector<2x4xi32>
    %c1_i32_0 = arith.constant 1 : i32
    %8 = vector.broadcast %c1_i32_0 : i32 to vector<2x4xi32>
    %9 = arith.shrsi %5, %8 : vector<2x4xi32>
    %10 = arith.cmpi eq, %4, %7 : vector<2x4xi32>
    %11 = vector.broadcast %2 : f32 to vector<2x4xf32>
    %c0_i32 = arith.constant 0 : i32
    %12 = vector.broadcast %c0_i32 : i32 to vector<2x4xi32>
    %13 = arith.cmpi eq, %4, %12 : vector<2x4xi32>
    %cst_1 = arith.constant 0.000000e+00 : f32
    %14 = arith.subf %cst_1, %3 : f32
    %15 = vector.broadcast %14 : f32 to vector<2x4xf32>
    %16 = vector.broadcast %3 : f32 to vector<2x4xf32>
    %17 = arith.select %13, %15, %16 : vector<2x4xi1>, vector<2x4xf32>
    %c0_i32_2 = arith.constant 0 : i32
    %18 = vector.broadcast %c0_i32_2 : i32 to vector<2x4xi32>
    %19 = arith.cmpi eq, %9, %18 : vector<2x4xi32>
    %20 = arith.select %19, %11, %17 : vector<2x4xi1>, vector<2x4xf32>
    %cst_3 = arith.constant 0.000000e+00 : f32
    %21 = vector.broadcast %cst_3 : f32 to vector<2x4xf32>
    %22 = arith.select %10, %20, %21 : vector<2x4xi1>, vector<2x4xf32>
    %c0_4 = arith.constant 0 : index
    %c0_5 = arith.constant 0 : index
    %23 = vector.load %arg1[%c0_4, %c0_5] : memref<2x4xf32, #tpu.memory_space<vmem>>, vector<2x4xf32>
    tpu.vector_store %arg1[%c0_4, %c0_5], %22 {strides = array<i32>} : memref<2x4xf32, #tpu.memory_space<vmem>>, vector<2x4xf32>,
    return
  }
}

</mosaic_0001>

<bundles_post_ra>
// kernel: tpu_custom_call.1
= control target key start
LH: loop header
LB: loop body
LE: loop exit
PB: predicated region body
PF: predicated region fallthrough
CT: control target
= control target key end

     0   :  { %s359_s0 = inlined_call_operand.<no memory space> [shape: f32[1], index: 0, kind: input, shape index: {}]   ;;  %s360_s1 = inlined_call_operand.hbm [shape: f32[2,4], index: 1, kind: output, shape index: {}]  }
   0x1   :  { %s11_s8 = smul.f32 0.5, %s359_s0 }
   0x3   :  { %v326_v0 = vstv %s11_s8 }
   0x4   :  { %7 = vsyncpa [#allocation4], 0  ;;  %v16_v1 = vand.u32 2139095040, %v326_v0  ;;  %v13_v3 = vand.u32 2147483647, %v326_v0  ;;  %vm15_vm7 = vcmp.lt.s32.totalorder %v326_v0, 0  ;;  %vm105_vm15 = vweird.f32 %v326_v0 }
   0x5   :  { %v306_v12 = vmov 683565275   ;;  %v307_v14 = vmov 2475754826   ;;  %v308_v16 = vmov 2131351028  }
   0x6   :  { %v17_v2 = vshrl.u32 %v16_v1, 23  ;;  %v20_v6 = vand.u32 8388607, %v13_v3  ;;  %v309_v18 = vmov 2102212464   ;;  %s312_s11 = smov [#allocation3]  }
   0x7   :  { %v310_v20 = vmov 920167782   ;;  %v311_v27 = vmov 1326507024   ;;  %vm14_vm8 = vcmp.le.f32.partialorder %v13_v3, 0.7853982 }
   0x8   :  { %v255_v4 = vadd.s32 4294967169, %v17_v2  ;;  %v21_v9 = vor.u32 8388608, %v20_v6  ;;  %s247_s12 = sshll.u32 %s312_s11, 4  ;;  %s248_s12 = int_to_ptr.vmem [resolvable:$true] %s247_s12 }
   0x9   :  { %s282_s13 = scalar_lea.vmem %s248_s12, 32  ;;  %p287_p1 = scmp.lt.s32.totalorder %s248_s12, %s248_s12 }
   0xa   :  { %v23_v5 = vadd.s32 1, %v255_v4  ;;  %v61_v29 = vshll.u32 %v21_v9, 8  ;;  %p283_p0 = scmp.ne.s32.totalorder %s248_s12, %s282_s13  ;;  %p288_p2 = scmp.lt.s32.totalorder %s282_s13, %s282_s13 }
   0xc   :  { %vm24_vm0 = vcmp.gt.s32.totalorder %v23_v5, 0  ;;  %p289_p3 = por %p288_p2, %p287_p1 }
   0xd   :  { %v25_v7 = vsel %vm24_vm0, %v23_v5, 0 }
   0xe   :  { %v27_v8 = vand.u32 31, %v25_v7  ;;  %v26_v10 = vshrl.u32 %v25_v7, 5  ;;  %p290_p4 = pnand %p289_p3, %p283_p0 }
  0x10   :  { %v28_v11 = vsub.s32 32, %v27_v8  ;;  %v30_v13 = vshll.u32 %v306_v12, %v27_v8  ;;  %v33_v15 = vshll.u32 %v307_v14, %v27_v8  ;;  %v36_v17 = vshll.u32 %v308_v16, %v27_v8 }
  0x11   :  { %v39_v19 = vshll.u32 %v309_v18, %v27_v8  ;;  %v42_v21 = vshll.u32 %v310_v20, %v27_v8  ;;  %vm45_vm1 = vcmp.lt.s32.totalorder %v26_v10, 1  ;;  %vm48_vm2 = vcmp.lt.s32.totalorder %v26_v10, 4 }
  0x12   :  { %v29_v22 = vshrl.u32 %v306_v12, %v28_v11  ;;  %v31_v23 = vshrl.u32 %v307_v14, %v28_v11  ;;  %v34_v24 = vshrl.u32 %v308_v16, %v28_v11  ;;  %v37_v25 = vshrl.u32 %v309_v18, %v28_v11 }
  0x13   :  { %v40_v26 = vshrl.u32 %v310_v20, %v28_v11  ;;  %v43_v28 = vshrl.u32 %v311_v27, %v28_v11  ;;  %vm46_vm3 = vcmp.lt.s32.totalorder %v26_v10, 2  ;;  %vm47_vm4 = vcmp.lt.s32.totalorder %v26_v10, 3 }
  0x14   :  { %v32_v30 = vor.u32 %v31_v23, %v30_v13  ;;  %v35_v31 = vor.u32 %v34_v24, %v33_v15  ;;  %v38_v32 = vor.u32 %v37_v25, %v36_v17 }
  0x15   :  { %v41_v33 = vor.u32 %v40_v26, %v39_v19  ;;  %v44_v34 = vor.u32 %v43_v28, %v42_v21 }
  0x16   :  { %v49_v35 = vsel %vm45_vm1, %v29_v22, %v32_v30  ;;  %v50_v36 = vsel %vm48_vm2, %v38_v32, 2102212464  ;;  %v53_v37 = vsel %vm45_vm1, %v32_v30, %v35_v31  ;;  %v57_v38 = vsel %vm45_vm1, %v35_v31, %v38_v32 }
  0x17   :  { %v51_v39 = vsel %vm47_vm4, %v35_v31, %v50_v36  ;;  %v54_v40 = vsel %vm48_vm2, %v41_v33, 920167782  ;;  %v58_v41 = vsel %vm48_vm2, %v44_v34, 1326507024  ;;  %v223_v34 = vlaneseq }
  0x18   :  { %v55_v42 = vsel %vm47_vm4, %v38_v32, %v54_v40  ;;  %v59_v43 = vsel %vm47_vm4, %v41_v33, %v58_v41  ;;  %v52_v44 = vsel %vm46_vm3, %v49_v35, %v51_v39 }
  0x19   :  { %v56_v45 = vsel %vm46_vm3, %v53_v37, %v55_v42  ;;  %v60_v46 = vsel %vm46_vm3, %v57_v38, %v59_v43  ;;  %v68_v51 = vmul.u32 %v61_v29, %v52_v44  ;;  %v226_v35 = vand.u32 127, %v223_v34 }
  0x1a   :  { %v332_v47 = vmul.u32.u64.low %v61_v29, %v60_v46  ;;  %v333_v48 = vmul.u32.u64.high %v61_v29, %v60_v46, %v332_v47  ;;  %v335_v49 = vmul.u32.u64.low %v61_v29, %v56_v45  ;;  %v336_v50 = vmul.u32.u64.high %v61_v29, %v56_v45, %v335_v49 }
  0x1b   :  { %v224_v36 = vshrl.u32 %v223_v34, 7  ;;  %v228_v37 = vshra.s32 %v226_v35, 1  ;;  %v227_v38 = vand.u32 1, %v226_v35  ;;  %vm239_vm3 = vcmask 25600  }
  0x1c   :  { %vm70_vm5 = vc.u32 %v333_v48, %v335_v49  ;;  %v71_v52 = vadd.s32 1, %v336_v50  ;;  %v69_v63 = vadd.s32 %v335_v49, %v333_v48 }
  0x1d   :  { %vm231_vm0 = vcmp.eq.s32.totalorder %v224_v36, 0  ;;  %vm236_vm1 = vcmp.eq.s32.totalorder %v228_v37, 0  ;;  %vm229_vm2 = vcmp.eq.s32.totalorder %v224_v36, %v227_v38 }
  0x1e   :  { %v72_v53 = vsel %vm70_vm5, %v71_v52, %v336_v50 }
  0x1f   :  { %v73_v54 = vadd.s32 %v72_v53, %v68_v51 }
  0x21   :  { %v74_v55 = vadd.s32 536870912, %v73_v54 }
  0x23   :  { %v75_v56 = vshrl.u32 %v74_v55, 30 }
  0x25   :  { %v76_v57 = vshll.u32 %v75_v56, 30  ;;  %v99_v13 = vsub.s32 4, %v75_v56 }
  0x27   :  { %v77_v58 = vsub.s32 %v73_v54, %v76_v57  ;;  %v100_v16 = vsel %vm15_vm7, %v99_v13, %v75_v56 }
  0x28   :  { %v102_v19 = vsel %vm14_vm8, 0, %v100_v16 }
  0x29   :  { %v79_v59 = vsub.s32 0, %v77_v58  ;;  %v211_v20 = vadd.s32 3, %v102_v19  ;;  %v106_v21 = vand.u32 3, %v102_v19 }
  0x2b   :  { %v256_v60 = vmin.u32 %v79_v59, %v77_v58  ;;  %v212_v22 = vand.u32 3, %v211_v20  ;;  %vm111_vm9 = vcmp.eq.s32.totalorder %v106_v21, 2  ;;  %vm108_vm11 = vcmp.eq.s32.totalorder %v106_v21, 0 }
  0x2c   :  { %vm107_vm13 = vcmp.lt.s32.totalorder %v106_v21, 2 }
  0x2d   :  { %v81_v61 = vclz %v256_v60  ;;  %vm217_vm10 = vcmp.eq.s32.totalorder %v212_v22, 2  ;;  %vm214_vm12 = vcmp.eq.s32.totalorder %v212_v22, 0  ;;  %vm213_vm14 = vcmp.lt.s32.totalorder %v212_v22, 2 }
  0x2f   :  { %v257_v62 = vadd.s32 4294967294, %v81_v61 }
  0x31   :  { %vm258_vm6 = vcmp.lt.s32.totalorder %v257_v62, 0 }
  0x32   :  { %v84_v1 = vsel %vm258_vm6, 0, %v257_v62 }
  0x33   :  { %v85_v2 = vsub.s32 32, %v84_v1  ;;  %v86_v4 = vshll.u32 %v77_v58, %v84_v1  ;;  %v89_v5 = vsub.s32 4294967266, %v84_v1 }
  0x35   :  { %v87_v6 = vshrl.u32 %v69_v63, %v85_v2  ;;  %v90_v7 = vadd.s32 127, %v89_v5 }
  0x37   :  { %v88_v8 = vor.u32 %v87_v6, %v86_v4  ;;  %v91_v9 = vshll.u32 %v90_v7, 23 }
  0x39   :  { %v92_v10 = vor.u32 4788187, %v91_v9  ;;  %v95_v11 = vcvt.s32.f32 %v88_v8 }
  0x3b   :  { %v93_v12 = vand.u32 2147483647, %v92_v10 }
  0x3d   :  { %v96_v14 = vmul.f32 %v95_v11, %v93_v12 }
  0x3f   :  { %v97_v15 = vxor.u32 2147483648, %v96_v14 }
  0x41   :  { %v98_v17 = vsel %vm15_vm7, %v97_v15, %v96_v14 }
  0x42   :  { %v101_v18 = vsel %vm14_vm8, %v326_v0, %v98_v17 }
  0x43   :  { %278 = vcosq.f32 %v101_v18 }
  0x44   :  { %280 = vsinq.f32 %v101_v18 }
  0x4d   :  { %v279_v23 = vpop.eup %278 }
  0x4e   :  { %v281_v24 = vpop.eup %280  ;;  %v112_v25 = vxor.u32 2147483648, %v279_v23 }
  0x4f   :  { %v109_v3 = vxor.u32 2147483648, %v281_v24 }
  0x50   :  { %v113_v26 = vsel %vm111_vm9, %v112_v25, %v281_v24  ;;  %v219_v27 = vsel %vm217_vm10, %v112_v25, %v281_v24 }
  0x51   :  { %v110_v28 = vsel %vm108_vm11, %v279_v23, %v109_v3  ;;  %v216_v29 = vsel %vm214_vm12, %v279_v23, %v109_v3 }
  0x52   :  { %v114_v30 = vsel %vm107_vm13, %v110_v28, %v113_v26  ;;  %v220_v31 = vsel %vm213_vm14, %v216_v29, %v219_v27 }
  0x53   :  { %v115_v32 = vsel %vm105_vm15, nan, %v114_v30  ;;  %v221_v33 = vsel %vm105_vm15, nan, %v220_v31 }
  0x54   :  { %267 = vpush %v115_v32 }
  0x55   :  { %269 = vpush %v221_v33 }
  0x85   :  { %s268_s0 = spop %267 }
  0x86   :  { %s270_s9 = spop %269  ;;  %v230_v40 = vstv %s268_s0 }
  0x87   :  { %s232_s10 = ssub.f32 0.0, %s270_s9  ;;  %v234_v39 = vstv %s270_s9 }
  0x89   :  { %v233_v0 = vstv %s232_s10 }
  0x8a   :  { %v235_v41 = vsel %vm231_vm0, %v233_v0, %v234_v39 }
  0x8b   :  { %v237_v42 = vsel %vm236_vm1, %v230_v40, %v235_v41 }
  0x8c   :  { %v238_v43 = vsel %vm229_vm2, %v237_v42, 0.0 }
  0x8d   :  { %240 = vst.msk [vmem:[#allocation3] sm:$0x3] %vm239_vm3, %v238_v43 }
  0x8e   :  { %293 = shalt.err (!%p290_p4)
}
  0x8f   :  { %s294_s16 = scalar_lea.hbm %s360_s1, 32 }
  0x90   :  { %p295_p5 = scmp.ne.s32.totalorder %s360_s1, %s294_s16  ;;  %p298_p6 = scmp.lt.u32.totalorder %s294_s16, %s360_s1 }
  0x92   :  { %p300_p7 = pnand %p298_p6, %p295_p5 }
  0x94   :  { %303 = shalt.err (!%p300_p7)
}
  0x95   :  { %250 = dma.vmem_to_hbm [thread:$0]  %s248_s12, 32, %s360_s1, [#allocation4]  }
  0x96   :  { %304 = dma.done.wait [#allocation4], 32  }
  0x97   :  { %305 = vsyncadd [#allocation4], 4294967264 }
  0x98   :  { %254 = vsyncpa [#allocation4], 1 }

</bundles_post_ra>
